<compile_context>
chip_gen: v6e
topology: v6e:2x2x1
jax: 0.10.0
libtpu: 0.0.40
codegen_flags: <defaults>
</compile_context>

<pallas_src>
import functools

import numpy as np
import jax
import jax.numpy as jnp
from jax.experimental import pallas as pl
from jax.experimental.pallas import tpu as pltpu

LEAKY_SLOPE = 0.01   # torch.nn.LeakyReLU default
BN_EPS = 1e-5        # torch.nn.BatchNorm1d default


def _leaky(x):
    # one mul + max (cheaper than compare+select+mul on the VPU)
    return jnp.maximum(x, LEAKY_SLOPE * x)


def _shifted(x):
    """x: (L, C*Tp).  Returns time-shifted views (x[t-1], x[t+1]).

    Correct without masks because every channel's trailing Tp-T >= 1 columns
    are zeros, so the value leaking across a channel boundary is always 0
    (identical to Conv1d(padding=1) zero padding)."""
    L = x.shape[0]
    zcol = jnp.zeros((L, 1), x.dtype)
    x_prev = jnp.concatenate([zcol, x[:, :-1]], axis=1)
    x_next = jnp.concatenate([x[:, 1:], zcol], axis=1)
    return x_prev, x_next


def _conv3(x, w1_ref):
    """k=3, pad=1 conv as three (F,L)x(L,C*Tp) MXU dots, f32 accumulation."""
    x_prev, x_next = _shifted(x)
    h = jnp.dot(w1_ref[1], x, preferred_element_type=jnp.float32)
    h += jnp.dot(w1_ref[0], x_prev, preferred_element_type=jnp.float32)
    h += jnp.dot(w1_ref[2], x_next, preferred_element_type=jnp.float32)
    return h                                                     # (F, C*Tp) f32


def _stats_kernel(x_ref, w1_ref, mask_ref, part_ref):
    """Pass 1: conv -> per-feature (sum, sumsq) partials for this batch entry."""
    h = _conv3(x_ref[0], w1_ref)                                 # (F, N) f32
    hm = h * mask_ref[...]                                       # zero out pad columns
    part_ref[0] = jnp.concatenate(
        [jnp.sum(hm, axis=1, keepdims=True),
         jnp.sum(hm * hm, axis=1, keepdims=True)], axis=1)       # (F, 2)


def _apply_kernel(x_ref, ss_ref, w1_ref, w2a_ref, w2b_ref, b2_ref, out_ref,
                  *, C, Tp, perm):
    """Pass 2: conv -> BN affine -> neighbor max -> LeakyReLU -> 1x1 conv -> LeakyReLU."""
    h = _conv3(x_ref[0], w1_ref)                                 # (F, N) f32
    hn = h * ss_ref[0] + ss_ref[1]                               # folded BN affine (FMA)

    # Neighbor max, degree-major: each step is a static per-channel lane-block
    # permutation of hn (channel blocks are Tp lanes wide, 128-aligned slabs).
    def chan_sel(v, idx):
        return jnp.concatenate([v[:, i * Tp:(i + 1) * Tp] for i in idx], axis=1)

    z = chan_sel(hn, perm[0])
    for d in range(1, len(perm)):
        z = jnp.maximum(z, chan_sel(hn, perm[d]))

    ha = _leaky(hn).astype(jnp.bfloat16)
    za = _leaky(z).astype(jnp.bfloat16)
    # merged 1x1 conv split in two: the (2F, N) concat is never materialized
    o = jnp.dot(w2a_ref[...], ha, preferred_element_type=jnp.float32)
    o += jnp.dot(w2b_ref[...], za, preferred_element_type=jnp.float32)
    res = _leaky(o + b2_ref[...])                                # (F, N) f32

    # emit channel-major (C, F, Tp): each channel block is a 128-aligned slab copy
    for c in range(C):
        out_ref[0, c] = res[:, c * Tp:(c + 1) * Tp]


def stc_layer_forward(x, params, neighbors):
    """x: (B, C, L, T) float32.  Returns (B, C, F, T) (PyTorch layout)."""
    B, C, L, T = x.shape
    F = params["w2a"].shape[0]

    # time padded to a lane-dense multiple of 128 with >= 1 zero column per channel
    Tp = (T // 128 + 1) * 128
    N = C * Tp

    # one-time repack: (B, C, L, T) f32 -> (B, L, C*Tp) bf16 (matmul layout)
    xt = jnp.transpose(x, (0, 2, 1, 3))
    xt = jnp.pad(xt, ((0, 0), (0, 0), (0, 0), (0, Tp - T)))
    xt = xt.reshape(B, L, N).astype(jnp.bfloat16)

    # mask of real (non-pad) time columns, used only for the BN statistics
    tmask = jnp.tile(jnp.arange(Tp) < T, C).astype(jnp.float32).reshape(1, N)

    const = lambda shape: pl.BlockSpec(shape, lambda b: (0,) * len(shape))
    per_b = lambda shape: pl.BlockSpec(shape, lambda b: (b,) + (0,) * (len(shape) - 1))
    cparams = pltpu.CompilerParams(
        dimension_semantics=("parallel",),        # independent per batch entry
        vmem_limit_bytes=32 * 1024 * 1024)        # v5e scoped default is only 16 MiB

    # ---- pass 1: conv + per-batch BN statistic partials (no h in HBM) ----
    pass1 = pl.pallas_call(
        _stats_kernel,
        grid=(B,),
        in_specs=[per_b((1, L, N)),               # x tile for batch b
                  const((3, F, L)),               # conv-1 weights (resident)
                  const((1, N))],                 # real-time-column mask
        out_specs=per_b((1, F, 2)),
        out_shape=jax.ShapeDtypeStruct((B, F, 2), jnp.float32),
        compiler_params=cparams,
    )
    parts = pass1(xt, params["w1"], tmask)        # (B, F, 2)

    # tiny fold: batch statistics -> (scale, shift).  Conv bias b1 cancels here
    # (training-mode BN only).  NOTE: E[h^2]-E[h]^2 in f32 is fine at these
    # scales; switch to centered accumulation for very large B*C*T.
    count = float(B * C * T)
    s = jnp.sum(parts, axis=0)                    # (F, 2)
    mean = s[:, 0] / count
    var = s[:, 1] / count - mean * mean           # biased variance (train mode)
    scale = params["gamma"] * jax.lax.rsqrt(var + BN_EPS)
    shift = params["beta"] - mean * scale
    ss = jnp.stack([scale, shift], axis=0).reshape(2, F, 1)

    # static, degree-padded neighbor permutations (max is idempotent under repeats)
    deg = max(len(nb) for nb in neighbors)
    perm = tuple(tuple(int(neighbors[c][min(d, len(neighbors[c]) - 1)])
                       for c in range(C)) for d in range(deg))

    # ---- pass 2: BN affine + neighbor max + LeakyReLU + split 1x1 conv ----
    pass2 = pl.pallas_call(
        functools.partial(_apply_kernel, C=C, Tp=Tp, perm=perm),
        grid=(B,),
        in_specs=[per_b((1, L, N)),
                  const((2, F, 1)),               # (scale, shift)
                  const((3, F, L)),
                  const((F, F)),                  # w2a (acts on leaky(h))
                  const((F, F)),                  # w2b (acts on leaky(z))
                  const((F, 1))],                 # b2
        out_specs=per_b((1, C, F, Tp)),
        out_shape=jax.ShapeDtypeStruct((B, C, F, Tp), jnp.float32),
        compiler_params=cparams,
    )
    out = pass2(xt, ss, params["w1"], params["w2a"], params["w2b"], params["b2"])
    return out[..., :T]


def init_params(key, L, F):
    """Deterministic synthetic parameters (torch-style) + kernel-layout views."""
    k1, k2, k3, k4, k5, k6 = jax.random.split(key, 6)
    w1_t = jax.random.normal(k1, (F, L, 3), jnp.float32) * 0.1      # Conv1d(L,F,3).weight
    b1 = jax.random.normal(k2, (F,), jnp.float32) * 0.1             # Conv1d(L,F,3).bias
    gamma = 1.0 + 0.1 * jax.random.normal(k3, (F,), jnp.float32)    # BatchNorm1d.weight
    beta = 0.1 * jax.random.normal(k4, (F,), jnp.float32)           # BatchNorm1d.bias
    w2_t = jax.random.normal(k5, (F, 2 * F, 1), jnp.float32) * 0.1  # Conv1d(2F,F,1).weight
    b2 = jax.random.normal(k6, (F,), jnp.float32) * 0.1

    params = dict(
        # w1[k, f, l] = w1_t[f, l, k]; tap k: 0 -> x[t-1], 1 -> x[t], 2 -> x[t+1]
        w1=jnp.transpose(w1_t, (2, 0, 1)).astype(jnp.bfloat16),
        gamma=gamma,
        beta=beta,
        w2a=w2_t[:, :F, 0].astype(jnp.bfloat16),                    # multiplies leaky(h)
        w2b=w2_t[:, F:, 0].astype(jnp.bfloat16),                    # multiplies leaky(z)
        b2=b2.reshape(F, 1),
        # b1 is not needed by the kernels: it cancels under train-mode BatchNorm.
    )
    torch_style = dict(w1_t=w1_t, b1=b1, gamma=gamma, beta=beta, w2_t=w2_t, b2=b2)
    return params, torch_style


def stc_layer_reference(x, ts, neighbors):
    """Pure-JAX reference mirroring the PyTorch forward exactly (f32, with b1)."""
    B, C, L, T = x.shape
    F = ts["b1"].shape[0]
    xr = x.reshape(B * C, L, T)
    h = jax.lax.conv_general_dilated(
        xr, ts["w1_t"], window_strides=(1,), padding=((1, 1),),
        dimension_numbers=("NCH", "OIH", "NCH"),
        precision=jax.lax.Precision.HIGHEST)
    h = h + ts["b1"][None, :, None]
    mean = jnp.mean(h, axis=(0, 2), keepdims=True)
    var = jnp.mean((h - mean) ** 2, axis=(0, 2), keepdims=True)
    h = (h - mean) / jnp.sqrt(var + BN_EPS)
    h = h * ts["gamma"][None, :, None] + ts["beta"][None, :, None]
    h = h.reshape(B, C, F, T)
    z = jnp.stack(
        [jnp.max(h[:, jnp.array(neighbors[cc]), :, :], axis=1) for cc in range(C)],
        axis=1)
    hz = _leaky(jnp.concatenate([h, z], axis=2)).reshape(B * C, 2 * F, T)
    o = jax.lax.conv_general_dilated(
        hz, ts["w2_t"], window_strides=(1,), padding=((0, 0),),
        dimension_numbers=("NCH", "OIH", "NCH"),
        precision=jax.lax.Precision.HIGHEST)
    o = _leaky(o + ts["b2"][None, :, None])
    return o.reshape(B, C, F, T)


if __name__ == "__main__":
    # x: (B, C, input_features, T); output_features = F
    B, C, L, T = 2, 4, 8, 16
    F = 8
    neighbors = [[0, 1], [0, 1, 2], [1, 2, 3], [2, 3]]

    key = jax.random.PRNGKey(0)
    kx, kp = jax.random.split(key)
    x = jax.random.normal(kx, (B, C, L, T), jnp.float32)
    params, torch_style = init_params(kp, L, F)

    fwd = jax.jit(functools.partial(stc_layer_forward, neighbors=neighbors))
    out = jax.block_until_ready(fwd(x, params))
    assert out.shape == (B, C, F, T)

    ref = jax.block_until_ready(stc_layer_reference(x, torch_style, neighbors))
    # tolerance 2e-2: matmul operands are bf16 (f32 accumulation on the MXU)
    np.testing.assert_allclose(np.asarray(out), np.asarray(ref), rtol=2e-2, atol=2e-2)
    print("KERNEL_OK")
</pallas_src>

<mosaic_0001>
module attributes {stable_mosaic.version = 11 : i64} {
  func.func @_apply_kernel(%arg0: i32, %arg1: memref<1x8x512xbf16, #tpu.memory_space<vmem>>, %arg2: memref<2x8x1xf32, #tpu.memory_space<vmem>>, %arg3: memref<3x8x8xbf16, #tpu.memory_space<vmem>>, %arg4: memref<8x8xbf16, #tpu.memory_space<vmem>>, %arg5: memref<8x8xbf16, #tpu.memory_space<vmem>>, %arg6: memref<8x1xf32, #tpu.memory_space<vmem>>, %arg7: memref<1x4x8x128xf32, #tpu.memory_space<vmem>>) attributes {dimension_semantics = [#tpu.dimension_semantics<parallel>], iteration_bounds = array<i64: 2>, scalar_prefetch = 0 : i64, scratch_operands = 0 : i64, tpu.core_type = #tpu.core_type<tc>, window_params = [{transform_indices = @transform_0, window_bounds = array<i64: 1, 8, 512>}, {pipeline_mode = #tpu.pipeline_mode<synchronous>, transform_indices = @transform_1, window_bounds = array<i64: 2, 8, 1>}, {pipeline_mode = #tpu.pipeline_mode<synchronous>, transform_indices = @transform_2, window_bounds = array<i64: 3, 8, 8>}, {pipeline_mode = #tpu.pipeline_mode<synchronous>, transform_indices = @transform_3, window_bounds = array<i64: 8, 8>}, {pipeline_mode = #tpu.pipeline_mode<synchronous>, transform_indices = @transform_4, window_bounds = array<i64: 8, 8>}, {pipeline_mode = #tpu.pipeline_mode<synchronous>, transform_indices = @transform_5, window_bounds = array<i64: 8, 1>}, {transform_indices = @transform_6, window_bounds = array<i64: 1, 4, 8, 128>}]} {
    %c0 = arith.constant 0 : index
    %c0_0 = arith.constant 0 : index
    %c0_1 = arith.constant 0 : index
    %0 = vector.load %arg1[%c0, %c0_0, %c0_1] : memref<1x8x512xbf16, #tpu.memory_space<vmem>>, vector<1x8x512xbf16>
    %1 = vector.shape_cast %0 : vector<1x8x512xbf16> to vector<8x512xbf16>
    %cst = arith.constant 0.000000e+00 : bf16
    %2 = vector.broadcast %cst : bf16 to vector<8x1xbf16>
    %3 = vector.extract_strided_slice %1 {offsets = [0, 0], sizes = [8, 511], strides = [1, 1]} : vector<8x512xbf16> to vector<8x511xbf16>
    %4 = tpu.concatenate %2, %3 in 1 : vector<8x1xbf16>, vector<8x511xbf16> -> vector<8x512xbf16>
    %5 = vector.extract_strided_slice %1 {offsets = [0, 1], sizes = [8, 511], strides = [1, 1]} : vector<8x512xbf16> to vector<8x511xbf16>
    %6 = tpu.concatenate %5, %2 in 1 : vector<8x511xbf16>, vector<8x1xbf16> -> vector<8x512xbf16>
    %c1 = arith.constant 1 : index
    %c0_2 = arith.constant 0 : index
    %c0_3 = arith.constant 0 : index
    %7 = vector.load %arg3[%c1, %c0_2, %c0_3] : memref<3x8x8xbf16, #tpu.memory_space<vmem>>, vector<1x8x8xbf16>
    %8 = vector.shape_cast %7 : vector<1x8x8xbf16> to vector<8x8xbf16>
    %cst_4 = arith.constant dense<0.000000e+00> : vector<8x512xf32>
    %9 = tpu.matmul %8, %1, %cst_4 {dimension_numbers = #tpu.dot_dimension_numbers<[1], [0], [0], [1], [0, 0, 1, 1], [], []>} : vector<8x8xbf16>, vector<8x512xbf16>, vector<8x512xf32> -> vector<8x512xf32>
    %c0_5 = arith.constant 0 : index
    %c0_6 = arith.constant 0 : index
    %c0_7 = arith.constant 0 : index
    %10 = vector.load %arg3[%c0_5, %c0_6, %c0_7] : memref<3x8x8xbf16, #tpu.memory_space<vmem>>, vector<1x8x8xbf16>
    %11 = vector.shape_cast %10 : vector<1x8x8xbf16> to vector<8x8xbf16>
    %cst_8 = arith.constant dense<0.000000e+00> : vector<8x512xf32>
    %12 = tpu.matmul %11, %4, %cst_8 {dimension_numbers = #tpu.dot_dimension_numbers<[1], [0], [0], [1], [0, 0, 1, 1], [], []>} : vector<8x8xbf16>, vector<8x512xbf16>, vector<8x512xf32> -> vector<8x512xf32>
    %13 = arith.addf %9, %12 : vector<8x512xf32>
    %c2 = arith.constant 2 : index
    %c0_9 = arith.constant 0 : index
    %c0_10 = arith.constant 0 : index
    %14 = vector.load %arg3[%c2, %c0_9, %c0_10] : memref<3x8x8xbf16, #tpu.memory_space<vmem>>, vector<1x8x8xbf16>
    %15 = vector.shape_cast %14 : vector<1x8x8xbf16> to vector<8x8xbf16>
    %cst_11 = arith.constant dense<0.000000e+00> : vector<8x512xf32>
    %16 = tpu.matmul %15, %6, %cst_11 {dimension_numbers = #tpu.dot_dimension_numbers<[1], [0], [0], [1], [0, 0, 1, 1], [], []>} : vector<8x8xbf16>, vector<8x512xbf16>, vector<8x512xf32> -> vector<8x512xf32>
    %17 = arith.addf %13, %16 : vector<8x512xf32>
    %c0_12 = arith.constant 0 : index
    %c0_13 = arith.constant 0 : index
    %c0_14 = arith.constant 0 : index
    %18 = vector.load %arg2[%c0_12, %c0_13, %c0_14] : memref<2x8x1xf32, #tpu.memory_space<vmem>>, vector<1x8x1xf32>
    %19 = vector.shape_cast %18 : vector<1x8x1xf32> to vector<8x1xf32>
    %20 = vector.broadcast %19 : vector<8x1xf32> to vector<8x512xf32>
    %21 = arith.mulf %17, %20 : vector<8x512xf32>
    %c1_15 = arith.constant 1 : index
    %c0_16 = arith.constant 0 : index
    %c0_17 = arith.constant 0 : index
    %22 = vector.load %arg2[%c1_15, %c0_16, %c0_17] : memref<2x8x1xf32, #tpu.memory_space<vmem>>, vector<1x8x1xf32>
    %23 = vector.shape_cast %22 : vector<1x8x1xf32> to vector<8x1xf32>
    %24 = vector.broadcast %23 : vector<8x1xf32> to vector<8x512xf32>
    %25 = arith.addf %21, %24 : vector<8x512xf32>
    %26 = vector.extract_strided_slice %25 {offsets = [0, 0], sizes = [8, 128], strides = [1, 1]} : vector<8x512xf32> to vector<8x128xf32>
    %27 = vector.extract_strided_slice %25 {offsets = [0, 0], sizes = [8, 128], strides = [1, 1]} : vector<8x512xf32> to vector<8x128xf32>
    %28 = vector.extract_strided_slice %25 {offsets = [0, 128], sizes = [8, 128], strides = [1, 1]} : vector<8x512xf32> to vector<8x128xf32>
    %29 = vector.extract_strided_slice %25 {offsets = [0, 256], sizes = [8, 128], strides = [1, 1]} : vector<8x512xf32> to vector<8x128xf32>
    %30 = tpu.concatenate %26, %27, %28, %29 in 1 : vector<8x128xf32>, vector<8x128xf32>, vector<8x128xf32>, vector<8x128xf32> -> vector<8x512xf32>
    %31 = vector.extract_strided_slice %25 {offsets = [0, 128], sizes = [8, 128], strides = [1, 1]} : vector<8x512xf32> to vector<8x128xf32>
    %32 = vector.extract_strided_slice %25 {offsets = [0, 128], sizes = [8, 128], strides = [1, 1]} : vector<8x512xf32> to vector<8x128xf32>
    %33 = vector.extract_strided_slice %25 {offsets = [0, 256], sizes = [8, 128], strides = [1, 1]} : vector<8x512xf32> to vector<8x128xf32>
    %34 = vector.extract_strided_slice %25 {offsets = [0, 384], sizes = [8, 128], strides = [1, 1]} : vector<8x512xf32> to vector<8x128xf32>
    %35 = tpu.concatenate %31, %32, %33, %34 in 1 : vector<8x128xf32>, vector<8x128xf32>, vector<8x128xf32>, vector<8x128xf32> -> vector<8x512xf32>
    %36 = arith.maximumf %30, %35 : vector<8x512xf32>
    %37 = vector.extract_strided_slice %25 {offsets = [0, 128], sizes = [8, 128], strides = [1, 1]} : vector<8x512xf32> to vector<8x128xf32>
    %38 = vector.extract_strided_slice %25 {offsets = [0, 256], sizes = [8, 128], strides = [1, 1]} : vector<8x512xf32> to vector<8x128xf32>
    %39 = vector.extract_strided_slice %25 {offsets = [0, 384], sizes = [8, 128], strides = [1, 1]} : vector<8x512xf32> to vector<8x128xf32>
    %40 = vector.extract_strided_slice %25 {offsets = [0, 384], sizes = [8, 128], strides = [1, 1]} : vector<8x512xf32> to vector<8x128xf32>
    %41 = tpu.concatenate %37, %38, %39, %40 in 1 : vector<8x128xf32>, vector<8x128xf32>, vector<8x128xf32>, vector<8x128xf32> -> vector<8x512xf32>
    %42 = arith.maximumf %36, %41 : vector<8x512xf32>
    %cst_18 = arith.constant 0.00999999977 : f32
    %43 = vector.broadcast %cst_18 : f32 to vector<8x512xf32>
    %44 = arith.mulf %43, %25 : vector<8x512xf32>
    %45 = arith.maximumf %25, %44 : vector<8x512xf32>
    %46 = arith.truncf %45 : vector<8x512xf32> to vector<8x512xbf16>
    %cst_19 = arith.constant 0.00999999977 : f32
    %47 = vector.broadcast %cst_19 : f32 to vector<8x512xf32>
    %48 = arith.mulf %47, %42 : vector<8x512xf32>
    %49 = arith.maximumf %42, %48 : vector<8x512xf32>
    %50 = arith.truncf %49 : vector<8x512xf32> to vector<8x512xbf16>
    %c0_20 = arith.constant 0 : index
    %c0_21 = arith.constant 0 : index
    %51 = vector.load %arg4[%c0_20, %c0_21] : memref<8x8xbf16, #tpu.memory_space<vmem>>, vector<8x8xbf16>
    %cst_22 = arith.constant dense<0.000000e+00> : vector<8x512xf32>
    %52 = tpu.matmul %51, %46, %cst_22 {dimension_numbers = #tpu.dot_dimension_numbers<[1], [0], [0], [1], [0, 0, 1, 1], [], []>} : vector<8x8xbf16>, vector<8x512xbf16>, vector<8x512xf32> -> vector<8x512xf32>
    %c0_23 = arith.constant 0 : index
    %c0_24 = arith.constant 0 : index
    %53 = vector.load %arg5[%c0_23, %c0_24] : memref<8x8xbf16, #tpu.memory_space<vmem>>, vector<8x8xbf16>
    %cst_25 = arith.constant dense<0.000000e+00> : vector<8x512xf32>
    %54 = tpu.matmul %53, %50, %cst_25 {dimension_numbers = #tpu.dot_dimension_numbers<[1], [0], [0], [1], [0, 0, 1, 1], [], []>} : vector<8x8xbf16>, vector<8x512xbf16>, vector<8x512xf32> -> vector<8x512xf32>
    %55 = arith.addf %52, %54 : vector<8x512xf32>
    %c0_26 = arith.constant 0 : index
    %c0_27 = arith.constant 0 : index
    %56 = vector.load %arg6[%c0_26, %c0_27] : memref<8x1xf32, #tpu.memory_space<vmem>>, vector<8x1xf32>
    %57 = vector.broadcast %56 : vector<8x1xf32> to vector<8x512xf32>
    %58 = arith.addf %55, %57 : vector<8x512xf32>
    %cst_28 = arith.constant 0.00999999977 : f32
    %59 = vector.broadcast %cst_28 : f32 to vector<8x512xf32>
    %60 = arith.mulf %59, %58 : vector<8x512xf32>
    %61 = arith.maximumf %58, %60 : vector<8x512xf32>
    %62 = vector.extract_strided_slice %61 {offsets = [0, 0], sizes = [8, 128], strides = [1, 1]} : vector<8x512xf32> to vector<8x128xf32>
    %c0_29 = arith.constant 0 : index
    %c0_30 = arith.constant 0 : index
    %c0_31 = arith.constant 0 : index
    %c0_32 = arith.constant 0 : index
    %63 = vector.load %arg7[%c0_29, %c0_30, %c0_31, %c0_32] : memref<1x4x8x128xf32, #tpu.memory_space<vmem>>, vector<1x1x8x128xf32>
    %64 = vector.shape_cast %63 : vector<1x1x8x128xf32> to vector<8x128xf32>
    %65 = vector.shape_cast %62 : vector<8x128xf32> to vector<1x1x8x128xf32>
    tpu.vector_store %arg7[%c0_29, %c0_30, %c0_31, %c0_32], %65 {strides = array<i32>} : memref<1x4x8x128xf32, #tpu.memory_space<vmem>>, vector<1x1x8x128xf32>,
    %66 = vector.extract_strided_slice %61 {offsets = [0, 128], sizes = [8, 128], strides = [1, 1]} : vector<8x512xf32> to vector<8x128xf32>
    %c0_33 = arith.constant 0 : index
    %c1_34 = arith.constant 1 : index
    %c0_35 = arith.constant 0 : index
    %c0_36 = arith.constant 0 : index
    %67 = vector.load %arg7[%c0_33, %c1_34, %c0_35, %c0_36] : memref<1x4x8x128xf32, #tpu.memory_space<vmem>>, vector<1x1x8x128xf32>
    %68 = vector.shape_cast %67 : vector<1x1x8x128xf32> to vector<8x128xf32>
    %69 = vector.shape_cast %66 : vector<8x128xf32> to vector<1x1x8x128xf32>
    tpu.vector_store %arg7[%c0_33, %c1_34, %c0_35, %c0_36], %69 {strides = array<i32>} : memref<1x4x8x128xf32, #tpu.memory_space<vmem>>, vector<1x1x8x128xf32>,
    %70 = vector.extract_strided_slice %61 {offsets = [0, 256], sizes = [8, 128], strides = [1, 1]} : vector<8x512xf32> to vector<8x128xf32>
    %c0_37 = arith.constant 0 : index
    %c2_38 = arith.constant 2 : index
    %c0_39 = arith.constant 0 : index
    %c0_40 = arith.constant 0 : index
    %71 = vector.load %arg7[%c0_37, %c2_38, %c0_39, %c0_40] : memref<1x4x8x128xf32, #tpu.memory_space<vmem>>, vector<1x1x8x128xf32>
    %72 = vector.shape_cast %71 : vector<1x1x8x128xf32> to vector<8x128xf32>
    %73 = vector.shape_cast %70 : vector<8x128xf32> to vector<1x1x8x128xf32>
    tpu.vector_store %arg7[%c0_37, %c2_38, %c0_39, %c0_40], %73 {strides = array<i32>} : memref<1x4x8x128xf32, #tpu.memory_space<vmem>>, vector<1x1x8x128xf32>,
    %74 = vector.extract_strided_slice %61 {offsets = [0, 384], sizes = [8, 128], strides = [1, 1]} : vector<8x512xf32> to vector<8x128xf32>
    %c0_41 = arith.constant 0 : index
    %c3 = arith.constant 3 : index
    %c0_42 = arith.constant 0 : index
    %c0_43 = arith.constant 0 : index
    %75 = vector.load %arg7[%c0_41, %c3, %c0_42, %c0_43] : memref<1x4x8x128xf32, #tpu.memory_space<vmem>>, vector<1x1x8x128xf32>
    %76 = vector.shape_cast %75 : vector<1x1x8x128xf32> to vector<8x128xf32>
    %77 = vector.shape_cast %74 : vector<8x128xf32> to vector<1x1x8x128xf32>
    tpu.vector_store %arg7[%c0_41, %c3, %c0_42, %c0_43], %77 {strides = array<i32>} : memref<1x4x8x128xf32, #tpu.memory_space<vmem>>, vector<1x1x8x128xf32>,
    return
  }
  func.func @transform_0(%arg0: i32) -> (i32, i32, i32) {
    %c0_i32 = arith.constant 0 : i32
    %c0_i32_0 = arith.constant 0 : i32
    %c0_i32_1 = arith.constant 0 : i32
    return %arg0, %c0_i32, %c0_i32_0 : i32, i32, i32
  }
  func.func @transform_1(%arg0: i32) -> (i32, i32, i32) {
    %c0_i32 = arith.constant 0 : i32
    %c0_i32_0 = arith.constant 0 : i32
    %c0_i32_1 = arith.constant 0 : i32
    %c0_i32_2 = arith.constant 0 : i32
    return %c0_i32, %c0_i32_0, %c0_i32_1 : i32, i32, i32
  }
  func.func @transform_2(%arg0: i32) -> (i32, i32, i32) {
    %c0_i32 = arith.constant 0 : i32
    %c0_i32_0 = arith.constant 0 : i32
    %c0_i32_1 = arith.constant 0 : i32
    %c0_i32_2 = arith.constant 0 : i32
    return %c0_i32, %c0_i32_0, %c0_i32_1 : i32, i32, i32
  }
  func.func @transform_3(%arg0: i32) -> (i32, i32) {
    %c0_i32 = arith.constant 0 : i32
    %c0_i32_0 = arith.constant 0 : i32
    %c0_i32_1 = arith.constant 0 : i32
    return %c0_i32, %c0_i32_0 : i32, i32
  }
  func.func @transform_4(%arg0: i32) -> (i32, i32) {
    %c0_i32 = arith.constant 0 : i32
    %c0_i32_0 = arith.constant 0 : i32
    %c0_i32_1 = arith.constant 0 : i32
    return %c0_i32, %c0_i32_0 : i32, i32
  }
  func.func @transform_5(%arg0: i32) -> (i32, i32) {
    %c0_i32 = arith.constant 0 : i32
    %c0_i32_0 = arith.constant 0 : i32
    %c0_i32_1 = arith.constant 0 : i32
    return %c0_i32, %c0_i32_0 : i32, i32
  }
  func.func @transform_6(%arg0: i32) -> (i32, i32, i32, i32) {
    %c0_i32 = arith.constant 0 : i32
    %c0_i32_0 = arith.constant 0 : i32
    %c0_i32_1 = arith.constant 0 : i32
    %c0_i32_2 = arith.constant 0 : i32
    return %arg0, %c0_i32, %c0_i32_0, %c0_i32_1 : i32, i32, i32, i32
  }
}

module attributes {stable_mosaic.version = 11 : i64} {
  func.func @_stats_kernel(%arg0: i32, %arg1: memref<1x8x512xbf16, #tpu.memory_space<vmem>>, %arg2: memref<3x8x8xbf16, #tpu.memory_space<vmem>>, %arg3: memref<1x512xf32, #tpu.memory_space<vmem>>, %arg4: memref<1x8x2xf32, #tpu.memory_space<vmem>>) attributes {dimension_semantics = [#tpu.dimension_semantics<parallel>], iteration_bounds = array<i64: 2>, scalar_prefetch = 0 : i64, scratch_operands = 0 : i64, tpu.core_type = #tpu.core_type<tc>, window_params = [{transform_indices = @transform_0, window_bounds = array<i64: 1, 8, 512>}, {pipeline_mode = #tpu.pipeline_mode<synchronous>, transform_indices = @transform_1, window_bounds = array<i64: 3, 8, 8>}, {pipeline_mode = #tpu.pipeline_mode<synchronous>, transform_indices = @transform_2, window_bounds = array<i64: 1, 512>}, {transform_indices = @transform_3, window_bounds = array<i64: 1, 8, 2>}]} {
    %c0 = arith.constant 0 : index
    %c0_0 = arith.constant 0 : index
    %c0_1 = arith.constant 0 : index
    %0 = vector.load %arg1[%c0, %c0_0, %c0_1] : memref<1x8x512xbf16, #tpu.memory_space<vmem>>, vector<1x8x512xbf16>
    %1 = vector.shape_cast %0 : vector<1x8x512xbf16> to vector<8x512xbf16>
    %cst = arith.constant 0.000000e+00 : bf16
    %2 = vector.broadcast %cst : bf16 to vector<8x1xbf16>
    %3 = vector.extract_strided_slice %1 {offsets = [0, 0], sizes = [8, 511], strides = [1, 1]} : vector<8x512xbf16> to vector<8x511xbf16>
    %4 = tpu.concatenate %2, %3 in 1 : vector<8x1xbf16>, vector<8x511xbf16> -> vector<8x512xbf16>
    %5 = vector.extract_strided_slice %1 {offsets = [0, 1], sizes = [8, 511], strides = [1, 1]} : vector<8x512xbf16> to vector<8x511xbf16>
    %6 = tpu.concatenate %5, %2 in 1 : vector<8x511xbf16>, vector<8x1xbf16> -> vector<8x512xbf16>
    %c1 = arith.constant 1 : index
    %c0_2 = arith.constant 0 : index
    %c0_3 = arith.constant 0 : index
    %7 = vector.load %arg2[%c1, %c0_2, %c0_3] : memref<3x8x8xbf16, #tpu.memory_space<vmem>>, vector<1x8x8xbf16>
    %8 = vector.shape_cast %7 : vector<1x8x8xbf16> to vector<8x8xbf16>
    %cst_4 = arith.constant dense<0.000000e+00> : vector<8x512xf32>
    %9 = tpu.matmul %8, %1, %cst_4 {dimension_numbers = #tpu.dot_dimension_numbers<[1], [0], [0], [1], [0, 0, 1, 1], [], []>} : vector<8x8xbf16>, vector<8x512xbf16>, vector<8x512xf32> -> vector<8x512xf32>
    %c0_5 = arith.constant 0 : index
    %c0_6 = arith.constant 0 : index
    %c0_7 = arith.constant 0 : index
    %10 = vector.load %arg2[%c0_5, %c0_6, %c0_7] : memref<3x8x8xbf16, #tpu.memory_space<vmem>>, vector<1x8x8xbf16>
    %11 = vector.shape_cast %10 : vector<1x8x8xbf16> to vector<8x8xbf16>
    %cst_8 = arith.constant dense<0.000000e+00> : vector<8x512xf32>
    %12 = tpu.matmul %11, %4, %cst_8 {dimension_numbers = #tpu.dot_dimension_numbers<[1], [0], [0], [1], [0, 0, 1, 1], [], []>} : vector<8x8xbf16>, vector<8x512xbf16>, vector<8x512xf32> -> vector<8x512xf32>
    %13 = arith.addf %9, %12 : vector<8x512xf32>
    %c2 = arith.constant 2 : index
    %c0_9 = arith.constant 0 : index
    %c0_10 = arith.constant 0 : index
    %14 = vector.load %arg2[%c2, %c0_9, %c0_10] : memref<3x8x8xbf16, #tpu.memory_space<vmem>>, vector<1x8x8xbf16>
    %15 = vector.shape_cast %14 : vector<1x8x8xbf16> to vector<8x8xbf16>
    %cst_11 = arith.constant dense<0.000000e+00> : vector<8x512xf32>
    %16 = tpu.matmul %15, %6, %cst_11 {dimension_numbers = #tpu.dot_dimension_numbers<[1], [0], [0], [1], [0, 0, 1, 1], [], []>} : vector<8x8xbf16>, vector<8x512xbf16>, vector<8x512xf32> -> vector<8x512xf32>
    %17 = arith.addf %13, %16 : vector<8x512xf32>
    %c0_12 = arith.constant 0 : index
    %c0_13 = arith.constant 0 : index
    %18 = vector.load %arg3[%c0_12, %c0_13] : memref<1x512xf32, #tpu.memory_space<vmem>>, vector<1x512xf32>
    %19 = vector.broadcast %18 : vector<1x512xf32> to vector<8x512xf32>
    %20 = arith.mulf %17, %19 : vector<8x512xf32>
    %cst_14 = arith.constant dense<0.000000e+00> : vector<8xf32>
    %21 = vector.multi_reduction <add>, %20, %cst_14 [1] : vector<8x512xf32> to vector<8xf32>
    %22 = vector.shape_cast %21 : vector<8xf32> to vector<8x1xf32>
    %23 = arith.mulf %20, %20 : vector<8x512xf32>
    %cst_15 = arith.constant dense<0.000000e+00> : vector<8xf32>
    %24 = vector.multi_reduction <add>, %23, %cst_15 [1] : vector<8x512xf32> to vector<8xf32>
    %25 = vector.shape_cast %24 : vector<8xf32> to vector<8x1xf32>
    %26 = tpu.concatenate %22, %25 in 1 : vector<8x1xf32>, vector<8x1xf32> -> vector<8x2xf32>
    %c0_16 = arith.constant 0 : index
    %c0_17 = arith.constant 0 : index
    %c0_18 = arith.constant 0 : index
    %27 = vector.load %arg4[%c0_16, %c0_17, %c0_18] : memref<1x8x2xf32, #tpu.memory_space<vmem>>, vector<1x8x2xf32>
    %28 = vector.shape_cast %27 : vector<1x8x2xf32> to vector<8x2xf32>
    %29 = vector.shape_cast %26 : vector<8x2xf32> to vector<1x8x2xf32>
    tpu.vector_store %arg4[%c0_16, %c0_17, %c0_18], %29 {strides = array<i32>} : memref<1x8x2xf32, #tpu.memory_space<vmem>>, vector<1x8x2xf32>,
    return
  }
  func.func @transform_0(%arg0: i32) -> (i32, i32, i32) {
    %c0_i32 = arith.constant 0 : i32
    %c0_i32_0 = arith.constant 0 : i32
    %c0_i32_1 = arith.constant 0 : i32
    return %arg0, %c0_i32, %c0_i32_0 : i32, i32, i32
  }
  func.func @transform_1(%arg0: i32) -> (i32, i32, i32) {
    %c0_i32 = arith.constant 0 : i32
    %c0_i32_0 = arith.constant 0 : i32
    %c0_i32_1 = arith.constant 0 : i32
    %c0_i32_2 = arith.constant 0 : i32
    return %c0_i32, %c0_i32_0, %c0_i32_1 : i32, i32, i32
  }
  func.func @transform_2(%arg0: i32) -> (i32, i32) {
    %c0_i32 = arith.constant 0 : i32
    %c0_i32_0 = arith.constant 0 : i32
    %c0_i32_1 = arith.constant 0 : i32
    return %c0_i32, %c0_i32_0 : i32, i32
  }
  func.func @transform_3(%arg0: i32) -> (i32, i32, i32) {
    %c0_i32 = arith.constant 0 : i32
    %c0_i32_0 = arith.constant 0 : i32
    %c0_i32_1 = arith.constant 0 : i32
    return %arg0, %c0_i32, %c0_i32_0 : i32, i32, i32
  }
}

</mosaic_0001>

<bundles_post_ra>
// kernel: stc_layer_forward.3
= control target key start
LH: loop header
LB: loop body
LE: loop exit
PB: predicated region body
PF: predicated region fallthrough
CT: control target
= control target key end

     0   :  { %11 = vsyncpa [#allocation3], 0  ;;  %s1312_s0 = inlined_call_operand.vmem [shape: bf16[2,8,512], index: 0, kind: input, shape index: {}]   ;;  %s1313_s1 = inlined_call_operand.vmem [shape: f32[2,8,1], index: 1, kind: input, shape index: {}]   ;;  %s1314_s2 = inlined_call_operand.vmem [shape: bf16[3,8,8], index: 2, kind: input, shape index: {}]   ;;  %s1315_s3 = inlined_call_operand.vmem [shape: bf16[8,8], index: 3, kind: input, shape index: {}]   ;;  %s1316_s4 = inlined_call_operand.vmem [shape: bf16[8,8], index: 4, kind: input, shape index: {}]   ;;  %s1317_s5 = inlined_call_operand.vmem [shape: f32[8,1], index: 5, kind: input, shape index: {}]   ;;  %s1318_s6 = inlined_call_operand.hbm [shape: f32[2,4,8,128], index: 6, kind: output, shape index: {}]  }
   0x1   :  { %13 = vsyncpa [#allocation3 + $0x1], 0  ;;  %s1140_s21 = smov 0   ;;  %s1142_s22 = smov 0  }
   0x2   :  { %s1144_s23 = smov 0   ;;  %s1146_s24 = smov 0  }
   0x3 LB: > { %s1161_s25 = sadd.s32 4294967295, %s1097_s24   ;;  %s943_s26 = sadd.s32 4294967294, %s1097_s24   ;;  %s1097_s24 = sphi %s1146_s24, %s1324_s24   ;;  %s1093_s23 = sphi %s1144_s23, %s1323_s23   ;;  %s1089_s22 = sphi %s1142_s22, %s1322_s22   ;;  %s1085_s21 = sphi %s1140_s21, %s1321_s21  }
   0x4   : > { %s1165_s27 = sadd.s32 1, %s1097_s24   ;;  %s157_s28 = sadd.s32 1, %s1093_s23 }
   0x5   : > { %s154_s29 = ssub.s32 %s1097_s24, %s1165_s27  ;;  %p167_p0 = scmp.ne.s32.totalorder %s1093_s23, %s1089_s22 }
   0x6   : > { %p155_p1 = scmp.eq.s32.totalorder %s154_s29, 0  ;;  %p168_p2 = scmp.eq.s32.totalorder %s1161_s25, 1 }
   0x7   : > { %p173_p3 = scmp.ne.s32.totalorder %s1089_s22, %s1085_s21  ;;  %p174_p4 = scmp.eq.s32.totalorder %s943_s26, 1 }
   0x8   : > { %s1176_s30 = scalar_select %p155_p1, %s1093_s23, %s157_s28  }
   0x9   : > { %p1178_p5 = por %p168_p2, %p167_p0  ;;  %p1182_p6 = por %p174_p4, %p173_p3 }
   0xa   : > { %p946_p7 = scmp.ge.s32.totalorder %s1097_s24, 1  ;;  %p215_p8 = scmp.lt.s32.totalorder %s1097_s24, 3 }
   0xc   : > { %p216_p9 = pnand %p946_p7, %p215_p8 }
   0xd   : > { %p245_p10 = scmp.lt.s32.totalorder (!%p216_p9), %s1161_s25, 1  ;;  %s1100_s14 = smov (!%p216_p9), 1  }
   0xe   : > { %219 = sbr.rel (%p216_p9) target bundleno = 607 (0x25f), region = 44  ;;  %s1101_s15 = smov (!%p216_p9), 127  }
   0xf   : > { %s242_s17 = sand.u32 (!%p216_p9), 1, %s1089_s22   ;;  %s986_s26 = sshll.u32 (!%p216_p9), %s1161_s25, 9 }
  0x10   : > { %s947_s18 = sshll.u32 (!%p216_p9), %s242_s17, 5  ;;  %s1102_s11 = smov (!%p216_p9), [#allocation2]  }
  0x11   : > { %s244_s19 = scalar_lea.vmem (!%p216_p9), [#allocation2], %s947_s18  ;;  %s1041_s12 = sshll.u32 (!%p216_p9), %s1102_s11, 4  ;;  %s1042_s12 = int_to_ptr.vmem [resolvable:$false] %s1041_s12 }
  0x12   : > { %s881_s20 = sshll.u32 (!%p216_p9), %s244_s19, 4  ;;  %s1263_s20 = int_to_ptr.vmem [resolvable:$true] %s881_s20 }
  0x13   : > { %s246_s9 = scalar_select %p245_p10, %s1161_s25, 1  ;;  %v1099_v0 = vmov 0   ;;  %v968_v7 = vld [vmem:[%s1313_s1 + $0x8] sm:$0xff]  ;;  %v594_v8 = vld [vmem:[%s1313_s1] sm:$0xff]  ;;  %vm271_vm0 = vcmask 7168   ;;  %vm301_vm1 = vcmask 1043456  }
  0x14   : > { %345 = vmatprep.mubr.bf16.mxu0 %v1099_v0  ;;  %386 = vmatprep.mubr.bf16.mxu1 %v1099_v0  ;;  %v842_v9 = vld [vmem:[%s1317_s5] sm:$0xff]  ;;  %vm297_vm2 = vcmask 64512   ;;  %vm287_vm3 = vcmask 1039360   ;;  %v963_v34 = vld [vmem:[%s1314_s2 + $0x8] sm:$0xf]  ;;  %s1272_s25 = scalar_lea.sflag [#allocation3], %s242_s17  ;;  %p1044_p0 = scmp.lt.s32.totalorder %s1263_s20, %s1042_s12 }
  0x15   : > { %s985_s10 = sshll.u32 %s246_s9, 4  ;;  %1032 = vset.pattern.permute.xlu1 %v1099_v0  ;;  %1031 = vset.pattern.permute.xlu0 %v1099_v0  ;;  %v296_v20 = vld [vmem:[%s1314_s2] sm:$0xf]  ;;  %v954_v31 = vld [vmem:[%s1314_s2 + $0x4] sm:$0xf]  ;;  %s1268_s9 = scalar_lea.hbm %s1318_s6, %s986_s26 }
  0x16   : > { %s249_s13 = scalar_lea.vmem %s1312_s0, %s985_s10  ;;  %s1037_s10 = scalar_lea.vmem %s1263_s20, 512 }
  0x17   : > { %v252_v1 = vld [vmem:[%s249_s13 + $0x8] sm:$0xff]  ;;  %v251_v2 = vld [vmem:[%s249_s13] sm:$0xff]  ;;  %p1038_p11 = scmp.ne.s32.totalorder %s1263_s20, %s1037_s10  ;;  %s1043_s13 = scalar_lea.vmem %s1042_s12, 1024 }
  0x18   : > { %v952_v3 = vcombine.low %v252_v1, %v252_v1  ;;  %v950_v4 = vcombine.low %v251_v2, %v251_v2  ;;  %v953_v5 = vcombine.high %v252_v1, %v252_v1  ;;  %v951_v6 = vcombine.high %v251_v2, %v251_v2  ;;  %p1045_p1 = scmp.lt.s32.totalorder %s1043_s13, %s1037_s10 }
  0x19   : > { %p1039_p12 = pnand %p1038_p11, %p1178_p5 }
  0x1a   : > { %267 = vrot.lane.b32.xlu1 %v952_v3, %s1100_s14  ;;  %263 = vrot.lane.b32.xlu0 %v950_v4, %s1100_s14  ;;  %v399_v22 = vsel %vm301_vm1, %v950_v4, 0  ;;  %v405_v23 = vsel %vm301_vm1, %v952_v3, 0  ;;  %p1046_p2 = por %p1045_p1, %p1044_p0 }
  0x1b   : > { %p1040_p13 = pneg %p1039_p12 }
  0x1d   : > { %p1047_p3 = pnand %p1046_p2, %p1040_p13 }
  0x1e   : > { %269 = vrot.lane.b32.xlu1 %v953_v5, %s1100_s14  ;;  %265 = vrot.lane.b32.xlu0 %v951_v6, %s1100_s14 }
  0x22   : > { %279 = vrot.lane.b32.xlu0 %v950_v4, %s1101_s15  ;;  %281 = vrot.lane.b32.xlu1 %v951_v6, %s1101_s15 }
  0x26   : > { %283 = vrot.lane.b32.xlu0 %v952_v3, %s1101_s15  ;;  %285 = vrot.lane.b32.xlu1 %v953_v5, %s1101_s15 }
  0x2a   : > { %608 = vperm.xlu1 %1032, %v968_v7   ;;  %597 = vperm.xlu0 %1031, %v594_v8  }
  0x2e   : > { %845 = vperm.xlu1 %1032, %v842_v9  }
  0x8c   : > { %v268_v10 = vpop.permute.xlu1 %267  ;;  %v264_v11 = vpop.permute.xlu0 %263 }
  0x8d   : > { %v278_v12 = vsel %vm271_vm0, 0, %v264_v11 }
  0x8e   : > { %v302_v18 = vsel %vm301_vm1, %v278_v12, 0 }
  0x90   : > { %v270_v13 = vpop.permute.xlu1 %269  ;;  %v266_v14 = vpop.permute.xlu0 %265 }
  0x91   : > { %v272_v15 = vsel %vm271_vm0, %v264_v11, %v266_v14  ;;  %v274_v16 = vsel %vm271_vm0, %v268_v10, %v270_v13  ;;  %v273_v17 = vsel %vm271_vm0, %v266_v14, %v268_v10 }
  0x92   : > { %955 = vmatprep.subr.msk.bf16.mxu0 %vm301_vm1, %v272_v15  ;;  %957 = vmatprep.subr.msk.bf16.mxu1 %vm301_vm1, %v274_v16  ;;  %v308_v19 = vsel %vm301_vm1, %v273_v17, 0 }
  0x93   : > { %328 = vmatpush1.bf16.msra.mxu0 %v302_v18  ;;  %369 = vmatpush1.bf16.msra.mxu1 %v308_v19 }
  0x94   : > { %v280_v21 = vpop.permute.xlu0 %279  ;;  %959 = vmatprep.subr.msk.bf16.mxu0 %vm301_vm1, %v951_v6  ;;  %961 = vmatprep.subr.msk.bf16.mxu1 %vm301_vm1, %v953_v5  ;;  %v282_v24 = vpop.permute.xlu1 %281 }
  0x95   : > { %v288_v27 = vsel %vm287_vm3, %v280_v21, %v282_v24 }
  0x96   : > { %956 = vmatmul.mubr.msk.bf16.vlgmr.msra.gmra.mxu0 %vm297_vm2, %v296_v20  ;;  %958 = vmatmul.mubr.msk.bf16.vlgmr.msra.gmra.mxu1 %vm297_vm2, %v296_v20  ;;  %v498_v32 = vsel %vm301_vm1, %v288_v27, 0 }
  0x97   : > { %425 = vmatpush1.bf16.msra.mxu0 %v399_v22  ;;  %466 = vmatpush1.bf16.msra.mxu1 %v405_v23 }
  0x98   : > { %v284_v25 = vpop.permute.xlu0 %283  ;;  %442 = vmatprep.mubr.bf16.mxu0 %v1099_v0  ;;  %483 = vmatprep.mubr.bf16.mxu1 %v1099_v0  ;;  %v286_v26 = vpop.permute.xlu1 %285 }
  0x99   : > { %v289_v28 = vsel %vm287_vm3, %v282_v24, %v284_v25  ;;  %v290_v29 = vsel %vm287_vm3, %v284_v25, %v286_v26  ;;  %v293_v30 = vsel %vm287_vm3, %v286_v26, 0 }
  0x9a   : > { %964 = vmatprep.subr.msk.bf16.mxu0 %vm301_vm1, %v289_v28  ;;  %966 = vmatprep.subr.msk.bf16.mxu1 %vm301_vm1, %v293_v30  ;;  %v504_v33 = vsel %vm301_vm1, %v290_v29, 0 }
  0x9e   : > { %960 = vmatmul.mubr.msk.bf16.vlgmr.msra.gmra.mxu0 %vm297_vm2, %v954_v31  ;;  %962 = vmatmul.mubr.msk.bf16.vlgmr.msra.gmra.mxu1 %vm297_vm2, %v954_v31 }
  0x9f   : > { %523 = vmatpush1.bf16.msra.mxu0 %v498_v32  ;;  %564 = vmatpush1.bf16.msra.mxu1 %v504_v33 }
  0xa0   : > { %540 = vmatprep.mubr.bf16.mxu0 %v1099_v0  ;;  %581 = vmatprep.mubr.bf16.mxu1 %v1099_v0 }
  0xa5   : > { %v598_v53 = vpop.permute.xlu0 %597  ;;  %v609_v5 = vpop.permute.xlu1 %608 }
  0xa6   : > { %965 = vmatmul.mubr.msk.bf16.vlgmr.msra.gmra.mxu0 %vm297_vm2, %v963_v34  ;;  %967 = vmatmul.mubr.msk.bf16.vlgmr.msra.gmra.mxu1 %vm297_vm2, %v963_v34 }
  0xa7   : > { %695 = vmatprep.mubr.bf16.mxu0 %v1099_v0  ;;  %736 = vmatprep.mubr.bf16.mxu1 %v1099_v0 }
 0x156   : > { %v347_v35 = vpop.f32.mrf.mxu0  ;;  %v388_v36 = vpop.f32.mrf.mxu1 }
 0x158   : > { %v349_v37 = vpop.f32.mrf.mxu0  ;;  %v390_v38 = vpop.f32.mrf.mxu1 }
 0x15a   : > { %v351_v39 = vpop.f32.mrf.mxu0  ;;  %v392_v40 = vpop.f32.mrf.mxu1 }
 0x15c   : > { %v352_v41 = vpop.f32.mrf.mxu0  ;;  %v393_v42 = vpop.f32.mrf.mxu1 }
 0x15e   : > { %v444_v43 = vpop.f32.mrf.mxu0  ;;  %v485_v44 = vpop.f32.mrf.mxu1 }
 0x15f   : > { %v445_v51 = vadd.f32 %v444_v43, %v347_v35  ;;  %v486_v52 = vadd.f32 %v485_v44, %v388_v36 }
 0x160   : > { %v446_v45 = vpop.f32.mrf.mxu0  ;;  %v487_v46 = vpop.f32.mrf.mxu1 }
 0x161   : > { %v447_v56 = vadd.f32 %v446_v45, %v349_v37  ;;  %v488_v57 = vadd.f32 %v487_v46, %v390_v38  ;;  %v647_v46 = vld [vmem:[%s1316_s4] sm:$0xf] }
 0x162   : > { %v448_v47 = vpop.f32.mrf.mxu0  ;;  %v489_v48 = vpop.f32.mrf.mxu1 }
 0x164   : > { %v449_v49 = vpop.f32.mrf.mxu0  ;;  %v490_v50 = vpop.f32.mrf.mxu1 }
 0x165   : > { %v646_v50 = vld [vmem:[%s1315_s3] sm:$0xf] }
 0x166   : > { %v542_v54 = vpop.f32.mrf.mxu0  ;;  %v583_v55 = vpop.f32.mrf.mxu1 }
 0x167   : > { %v590_v58 = vadd.f32 %v542_v54, %v445_v51  ;;  %v592_v59 = vadd.f32 %v583_v55, %v486_v52 }
 0x168   : > { %v585_v60 = vpop.f32.mrf.mxu1  ;;  %v544_v61 = vpop.f32.mrf.mxu0 }
 0x169   : > { %v593_v62 = vadd.f32 %v585_v60, %v488_v57  ;;  %v600_v63 = vmul.f32 %v598_v53, %v590_v58  ;;  %v602_v1 = vmul.f32 %v598_v53, %v592_v59  ;;  %v591_v2 = vadd.f32 %v544_v61, %v447_v56  ;;  %v846_v61 = vpop.permute.xlu1 %845 }
 0x16a   : > { %v546_v3 = vpop.f32.mrf.mxu0  ;;  %v587_v4 = vpop.f32.mrf.mxu1 }
 0x16b   : > { %v603_v6 = vmul.f32 %v598_v53, %v593_v62  ;;  %v601_v7 = vmul.f32 %v598_v53, %v591_v2  ;;  %v611_v8 = vadd.f32 %v609_v5, %v600_v63  ;;  %v613_v11 = vadd.f32 %v609_v5, %v602_v1 }
 0x16c   : > { %v547_v9 = vpop.f32.mrf.mxu0  ;;  %v588_v10 = vpop.f32.mrf.mxu1 }
 0x16d   : > { %v614_v12 = vadd.f32 %v609_v5, %v603_v6  ;;  %v612_v13 = vadd.f32 %v609_v5, %v601_v7  ;;  %v622_v18 = vmul.f32 0.01, %v611_v8  ;;  %v624_v24 = vmul.f32 0.01, %v613_v11 }
 0x16f   : > { %v615_v14 = vmax.f32 %v611_v8, %v612_v13  ;;  %v617_v15 = vmax.f32 %v613_v11, %v614_v12  ;;  %v616_v16 = vmax.f32 %v612_v13, %v613_v11  ;;  %v623_v17 = vmul.f32 0.01, %v612_v13 }
 0x170   : > { %v625_v23 = vmul.f32 0.01, %v614_v12  ;;  %v626_v29 = vmax.f32 %v611_v8, %v622_v18  ;;  %v628_v36 = vmax.f32 %v613_v11, %v624_v24 }
 0x171   : > { %v619_v19 = vmax.f32 %v615_v14, %v613_v11  ;;  %v621_v20 = vmax.f32 %v617_v15, %v614_v12  ;;  %v618_v21 = vmax.f32 %v615_v14, %v612_v13  ;;  %v620_v22 = vmax.f32 %v616_v16, %v614_v12 }
 0x172   : > { %v627_v33 = vmax.f32 %v612_v13, %v623_v17  ;;  %v629_v35 = vmax.f32 %v614_v12, %v625_v23  ;;  %v630_v43 = vpack.c.bf16 %v626_v29, %v626_v29  ;;  %v632_v47 = vpack.c.bf16 %v628_v36, %v628_v36 }
 0x173   : > { %v635_v25 = vmul.f32 0.01, %v619_v19  ;;  %v637_v26 = vmul.f32 0.01, %v621_v20  ;;  %v634_v27 = vmul.f32 0.01, %v618_v21 }
 0x174   : > { %v636_v28 = vmul.f32 0.01, %v620_v22  ;;  %v631_v42 = vpack.c.bf16 %v627_v33, %v627_v33  ;;  %v633_v45 = vpack.c.bf16 %v629_v35, %v629_v35  ;;  %v749_v48 = vsel %vm301_vm1, %v630_v43, 0 }
 0x175   : > { %v639_v30 = vmax.f32 %v619_v19, %v635_v25  ;;  %v641_v31 = vmax.f32 %v621_v20, %v637_v26  ;;  %v638_v32 = vmax.f32 %v618_v21, %v634_v27  ;;  %v755_v49 = vsel %vm301_vm1, %v632_v47, 0 }
 0x176   : > { %v640_v34 = vmax.f32 %v620_v22, %v636_v28 }
 0x177   : > { %v643_v37 = vpack.c.bf16 %v639_v30, %v639_v30  ;;  %v645_v38 = vpack.c.bf16 %v641_v31, %v641_v31  ;;  %v642_v39 = vpack.c.bf16 %v638_v32, %v638_v32 }
 0x178   : > { %v644_v40 = vpack.c.bf16 %v640_v34, %v640_v34 }
 0x179   : > { %969 = vmatprep.subr.msk.bf16.mxu0 %vm301_vm1, %v643_v37  ;;  %971 = vmatprep.subr.msk.bf16.mxu1 %vm301_vm1, %v645_v38  ;;  %v652_v41 = vsel %vm301_vm1, %v642_v39, 0 }
 0x17a   : > { %678 = vmatpush1.bf16.msra.mxu0 %v652_v41  ;;  %v658_v44 = vsel %vm301_vm1, %v644_v40, 0 }
 0x17b   : > { %719 = vmatpush1.bf16.msra.mxu1 %v658_v44  ;;  %973 = vmatprep.subr.msk.bf16.mxu0 %vm301_vm1, %v631_v42 }
 0x17c   : > { %975 = vmatprep.subr.msk.bf16.mxu1 %vm301_vm1, %v633_v45 }
 0x17d   : > { %970 = vmatmul.mubr.msk.bf16.vlgmr.msra.gmra.mxu0 %vm297_vm2, %v647_v46 }
 0x17e   : > { %972 = vmatmul.mubr.msk.bf16.vlgmr.msra.gmra.mxu1 %vm297_vm2, %v647_v46  ;;  %775 = vmatpush1.bf16.msra.mxu0 %v749_v48 }
 0x17f   : > { %816 = vmatpush1.bf16.msra.mxu1 %v755_v49  ;;  %792 = vmatprep.mubr.bf16.mxu0 %v1099_v0 }
 0x180   : > { %833 = vmatprep.mubr.bf16.mxu1 %v1099_v0 }
 0x185   : > { %974 = vmatmul.mubr.msk.bf16.vlgmr.msra.gmra.mxu0 %vm297_vm2, %v646_v50 }
 0x186   : > { %976 = vmatmul.mubr.msk.bf16.vlgmr.msra.gmra.mxu1 %vm297_vm2, %v646_v50 }
 0x23d   : > { %v697_v51 = vpop.f32.mrf.mxu0 }
 0x23e   : > { %v738_v52 = vpop.f32.mrf.mxu1 }
 0x23f   : > { %v699_v53 = vpop.f32.mrf.mxu0 }
 0x240   : > { %v740_v54 = vpop.f32.mrf.mxu1 }
 0x241   : > { %v701_v55 = vpop.f32.mrf.mxu0 }
 0x242   : > { %v742_v56 = vpop.f32.mrf.mxu1 }
 0x243   : > { %v702_v57 = vpop.f32.mrf.mxu0 }
 0x244   : > { %v743_v58 = vpop.f32.mrf.mxu1 }
 0x245   : > { %v794_v0 = vpop.f32.mrf.mxu0 }
 0x246   : > { %v795_v59 = vadd.f32 %v794_v0, %v697_v51  ;;  %v835_v60 = vpop.f32.mrf.mxu1 }
 0x247   : > { %v836_v62 = vadd.f32 %v835_v60, %v738_v52  ;;  %v796_v63 = vpop.f32.mrf.mxu0 }
 0x248   : > { %v848_v1 = vadd.f32 %v846_v61, %v795_v59  ;;  %v797_v2 = vadd.f32 %v796_v63, %v699_v53  ;;  %v837_v3 = vpop.f32.mrf.mxu1 }
 0x249   : > { %v850_v4 = vadd.f32 %v846_v61, %v836_v62  ;;  %v838_v5 = vadd.f32 %v837_v3, %v740_v54  ;;  %v798_v6 = vpop.f32.mrf.mxu0 }
 0x24a   : > { %v852_v7 = vmul.f32 0.01, %v848_v1  ;;  %v849_v8 = vadd.f32 %v846_v61, %v797_v2  ;;  %v839_v9 = vpop.f32.mrf.mxu1 }
 0x24b   : > { %v854_v10 = vmul.f32 0.01, %v850_v4  ;;  %v851_v11 = vadd.f32 %v846_v61, %v838_v5  ;;  %v799_v12 = vpop.f32.mrf.mxu0 }
 0x24c   : > { %v856_v13 = vmax.f32 %v848_v1, %v852_v7  ;;  %v853_v14 = vmul.f32 0.01, %v849_v8  ;;  %v840_v15 = vpop.f32.mrf.mxu1 }
 0x24d   : > { %v858_v16 = vmax.f32 %v850_v4, %v854_v10  ;;  %v855_v17 = vmul.f32 0.01, %v851_v11 }
 0x24e   : > { %860 = vst [vmem:[%s244_s19] sm:$0xff] %v856_v13  ;;  %v857_v18 = vmax.f32 %v849_v8, %v853_v14 }
 0x24f   : > { %978 = vst [vmem:[%s244_s19 + $0x10] sm:$0xff] %v858_v16  ;;  %v859_v19 = vmax.f32 %v851_v11, %v855_v17 }
 0x250   : > { %977 = vst [vmem:[%s244_s19 + $0x8] sm:$0xff] %v857_v18 }
 0x251   : > { %979 = vst [vmem:[%s244_s19 + $0x18] sm:$0xff] %v859_v19 }
 0x252   : > { %1050 = shalt.err (!%p1047_p3)
}
 0x253   : > { %s1051_s14 = scalar_lea.hbm %s1268_s9, 512  ;;  %s1055_s17 = scalar_lea.hbm %s1318_s6, 1024 }
 0x254   : > { %p1052_p4 = scmp.ne.s32.totalorder %s1268_s9, %s1051_s14  ;;  %p1056_p9 = scmp.lt.s32.totalorder %s1268_s9, %s1318_s6 }
 0x255   : > { %p1057_p10 = scmp.lt.s32.totalorder %s1055_s17, %s1051_s14 }
 0x256   : > { %p1053_p7 = pnand %p1052_p4, %p1178_p5 }
 0x257   : > { %p1058_p11 = por %p1057_p10, %p1056_p9 }
 0x258   : > { %p1054_p8 = pneg %p1053_p7 }
 0x25a   : > { %p1059_p12 = pnand %p1058_p11, %p1054_p8 }
 0x25c   : > { %1062 = shalt.err (!%p1059_p12)
}
 0x25d   : > { %s1103_s26 = smov 128   ;;  %s1104_s28 = smov 8  }
 0x25e   : > { %987 = dma.vmem_to_hbm [thread:$0]  (%p1178_p5), %s1263_s20, 512, %s1268_s9, %s1272_s25, %s1103_s26, %s1103_s26, %s1104_s28  }
 0x25f PF: > { %p993_p13 = scmp.ge.s32.totalorder %s1097_s24, 2  ;;  %s896_s29 = sand.u32 1, %s1085_s21  }
 0x260   : > { %s897_s10 = scalar_lea.sflag [#allocation3], %s896_s29 }
 0x261   : > { %p990_p0 = pnand %p993_p13, %p1182_p6 }
 0x263   : > { %p991_p1 = pneg %p990_p0 }
 0x265   : > { %1080 = dma.done.wait (%p991_p1), %s897_s10, 512  }
 0x266   : > { %1082 = vsyncadd (%p991_p1), %s897_s10, 4294966784  ;;  %p16_p2 = scmp.ge.s32.totalorder %s1165_s27, 4   ;;  %s1321_s21 = smov %s1089_s22 }
 0x267   : > { %s1322_s22 = smov %s1093_s23  ;;  %s1323_s23 = smov %s1176_s30 }
 0x268   : > { %s1324_s24 = smov %s1165_s27  ;;  %18 = sbr.rel (!%p16_p2) target bundleno = 3 (0x3), region = 85 }
 0x26d   :  { %902 = vsyncpa [#allocation3], 1 }
 0x26e   :  { %904 = vsyncpa [#allocation3 + $0x1], 1 }

// kernel: stc_layer_forward.2
= control target key start
LH: loop header
LB: loop body
LE: loop exit
PB: predicated region body
PF: predicated region fallthrough
CT: control target
= control target key end

     0   :  { %s684_s12 = smov 0   ;;  %s746_s0 = inlined_call_operand.vmem [shape: bf16[2,8,512], index: 0, kind: input, shape index: {}]   ;;  %s747_s1 = inlined_call_operand.vmem [shape: bf16[3,8,8], index: 1, kind: input, shape index: {}]   ;;  %s748_s2 = inlined_call_operand.vmem [shape: f32[1,512], index: 2, kind: input, shape index: {}]   ;;  %s749_s3 = inlined_call_operand.vmem [shape: f32[2,8,2], index: 3, kind: output, shape index: {}]  }
   0x1 LB: > { %s609_s13 = sadd.s32 4294967295, %s659_s12   ;;  %p613_p0 = scmp.ge.s32.totalorder %s659_s12, 1  ;;  %s659_s12 = sphi %s684_s12, %s13_s12  }
   0x2   : > { %p137_p1 = scmp.lt.s32.totalorder %s659_s12, 3 }
   0x4   : > { %p138_p2 = pnand %p613_p0, %p137_p1 }
   0x5   : > { %p160_p3 = scmp.lt.s32.totalorder (!%p138_p2), %s609_s13, 1  ;;  %s662_s18 = smov (!%p138_p2), 1  }
   0x6   : > { %141 = sbr.rel (%p138_p2) target bundleno = 504 (0x1f8), region = 32  ;;  %s663_s19 = smov (!%p138_p2), 127  }
   0xb   : > { %s751_s13 = smov (!%p160_p3, %s609_s13), 1  ;;  %v661_v0 = vmov 0   ;;  %vm190_vm0 = vcmask 7168   ;;  %vm220_vm1 = vcmask 1043456   ;;  %v215_v17 = vld [vmem:[%s747_s1] sm:$0xf]  ;;  %v515_v36 = vlaneseq }
   0xc   : > { %264 = vmatprep.mubr.bf16.mxu0 %v661_v0  ;;  %305 = vmatprep.mubr.bf16.mxu1 %v661_v0  ;;  %s637_s14 = sshll.u32 %s751_s13, 4  ;;  %vm216_vm2 = vcmask 64512   ;;  %vm206_vm3 = vcmask 1039360   ;;  %v621_v28 = vld [vmem:[%s747_s1 + $0x4] sm:$0xf]  ;;  %s616_s28 = sshll.u32 %s751_s13, 3 }
   0xd   : > { %s164_s17 = scalar_lea.vmem %s746_s0, %s637_s14  ;;  %v630_v31 = vld [vmem:[%s747_s1 + $0x8] sm:$0xf]  ;;  %v516_v41 = vshrl.u32 %v515_v36, 7  ;;  %v513_v49 = vld [vmem:[%s748_s2] sm:$0xf]  ;;  %s168_s4 = scalar_lea.vmem %s749_s3, %s616_s28  ;;  %vm554_vm4 = vcmask 15360  }
   0xe   : > { %v171_v1 = vld [vmem:[%s164_s17 + $0x8] sm:$0xff]  ;;  %v170_v2 = vld [vmem:[%s164_s17] sm:$0xff] }
   0xf   : > { %v619_v3 = vcombine.low %v171_v1, %v171_v1  ;;  %v617_v4 = vcombine.low %v170_v2, %v170_v2  ;;  %v620_v5 = vcombine.high %v171_v1, %v171_v1  ;;  %v618_v6 = vcombine.high %v170_v2, %v170_v2 }
  0x10   : > { %v517_v46 = vsub.s32 0, %v516_v41  ;;  %v525_v50 = vsub.s32 2, %v516_v41  ;;  %v521_v51 = vsub.s32 1, %v516_v41  ;;  %v529_v57 = vsub.s32 3, %v516_v41 }
  0x11   : > { %186 = vrot.lane.b32.xlu1 %v619_v3, %s662_s18  ;;  %182 = vrot.lane.b32.xlu0 %v617_v4, %s662_s18  ;;  %v318_v19 = vsel %vm220_vm1, %v617_v4, 0  ;;  %v324_v21 = vsel %vm220_vm1, %v619_v3, 0 }
  0x12   : > { %v518_v56 = vrot.slane %v513_v49, %v517_v46  ;;  %v526_v60 = vrot.slane %v513_v49, %v525_v50  ;;  %v522_v61 = vrot.slane %v513_v49, %v521_v51 }
  0x15   : > { %188 = vrot.lane.b32.xlu1 %v620_v5, %s662_s18  ;;  %184 = vrot.lane.b32.xlu0 %v618_v6, %s662_s18 }
  0x19   : > { %198 = vrot.lane.b32.xlu0 %v617_v4, %s663_s19  ;;  %200 = vrot.lane.b32.xlu1 %v618_v6, %s663_s19 }
  0x1d   : > { %202 = vrot.lane.b32.xlu0 %v619_v3, %s663_s19  ;;  %204 = vrot.lane.b32.xlu1 %v620_v5, %s663_s19 }
  0x83   : > { %v187_v7 = vpop.permute.xlu1 %186  ;;  %v183_v8 = vpop.permute.xlu0 %182 }
  0x84   : > { %v197_v9 = vsel %vm190_vm0, 0, %v183_v8 }
  0x85   : > { %v221_v15 = vsel %vm220_vm1, %v197_v9, 0 }
  0x87   : > { %v189_v10 = vpop.permute.xlu1 %188  ;;  %v185_v11 = vpop.permute.xlu0 %184 }
  0x88   : > { %v191_v12 = vsel %vm190_vm0, %v183_v8, %v185_v11  ;;  %v193_v13 = vsel %vm190_vm0, %v187_v7, %v189_v10  ;;  %v192_v14 = vsel %vm190_vm0, %v185_v11, %v187_v7  ;;  %v530_v7 = vrot.slane %v513_v49, %v529_v57 }
  0x89   : > { %622 = vmatprep.subr.msk.bf16.mxu0 %vm220_vm1, %v191_v12  ;;  %624 = vmatprep.subr.msk.bf16.mxu1 %vm220_vm1, %v193_v13  ;;  %v227_v16 = vsel %vm220_vm1, %v192_v14, 0 }
  0x8a   : > { %247 = vmatpush1.bf16.msra.mxu0 %v221_v15  ;;  %288 = vmatpush1.bf16.msra.mxu1 %v227_v16 }
  0x8b   : > { %626 = vmatprep.subr.msk.bf16.mxu0 %vm220_vm1, %v618_v6  ;;  %v199_v18 = vpop.permute.xlu0 %198  ;;  %v201_v20 = vpop.permute.xlu1 %200  ;;  %628 = vmatprep.subr.msk.bf16.mxu1 %vm220_vm1, %v620_v5 }
  0x8c   : > { %v207_v24 = vsel %vm206_vm3, %v199_v18, %v201_v20 }
  0x8d   : > { %623 = vmatmul.mubr.msk.bf16.vlgmr.msra.gmra.mxu0 %vm216_vm2, %v215_v17  ;;  %625 = vmatmul.mubr.msk.bf16.vlgmr.msra.gmra.mxu1 %vm216_vm2, %v215_v17  ;;  %v417_v29 = vsel %vm220_vm1, %v207_v24, 0 }
  0x8e   : > { %344 = vmatpush1.bf16.msra.mxu0 %v318_v19  ;;  %385 = vmatpush1.bf16.msra.mxu1 %v324_v21 }
  0x8f   : > { %v203_v22 = vpop.permute.xlu0 %202  ;;  %v205_v23 = vpop.permute.xlu1 %204  ;;  %361 = vmatprep.mubr.bf16.mxu0 %v661_v0  ;;  %402 = vmatprep.mubr.bf16.mxu1 %v661_v0 }
  0x90   : > { %v208_v25 = vsel %vm206_vm3, %v201_v20, %v203_v22  ;;  %v209_v26 = vsel %vm206_vm3, %v203_v22, %v205_v23  ;;  %v212_v27 = vsel %vm206_vm3, %v205_v23, 0 }
  0x91   : > { %631 = vmatprep.subr.msk.bf16.mxu0 %vm220_vm1, %v208_v25  ;;  %633 = vmatprep.subr.msk.bf16.mxu1 %vm220_vm1, %v212_v27  ;;  %v423_v30 = vsel %vm220_vm1, %v209_v26, 0 }
  0x95   : > { %627 = vmatmul.mubr.msk.bf16.vlgmr.msra.gmra.mxu0 %vm216_vm2, %v621_v28  ;;  %629 = vmatmul.mubr.msk.bf16.vlgmr.msra.gmra.mxu1 %vm216_vm2, %v621_v28 }
  0x96   : > { %442 = vmatpush1.bf16.msra.mxu0 %v417_v29  ;;  %483 = vmatpush1.bf16.msra.mxu1 %v423_v30 }
  0x97   : > { %459 = vmatprep.mubr.bf16.mxu0 %v661_v0  ;;  %500 = vmatprep.mubr.bf16.mxu1 %v661_v0 }
  0x9d   : > { %632 = vmatmul.mubr.msk.bf16.vlgmr.msra.gmra.mxu0 %vm216_vm2, %v630_v31  ;;  %634 = vmatmul.mubr.msk.bf16.vlgmr.msra.gmra.mxu1 %vm216_vm2, %v630_v31 }
 0x14d   : > { %v266_v32 = vpop.f32.mrf.mxu0  ;;  %v307_v33 = vpop.f32.mrf.mxu1 }
 0x14f   : > { %v268_v34 = vpop.f32.mrf.mxu0  ;;  %v309_v35 = vpop.f32.mrf.mxu1 }
 0x151   : > { %v270_v37 = vpop.f32.mrf.mxu0  ;;  %v311_v38 = vpop.f32.mrf.mxu1 }
 0x153   : > { %v271_v39 = vpop.f32.mrf.mxu0  ;;  %v312_v40 = vpop.f32.mrf.mxu1 }
 0x155   : > { %v363_v42 = vpop.f32.mrf.mxu0  ;;  %v404_v43 = vpop.f32.mrf.mxu1 }
 0x156   : > { %v364_v54 = vadd.f32 %v363_v42, %v266_v32  ;;  %v405_v55 = vadd.f32 %v404_v43, %v307_v33 }
 0x157   : > { %v365_v44 = vpop.f32.mrf.mxu0  ;;  %v406_v45 = vpop.f32.mrf.mxu1 }
 0x158   : > { %v366_v62 = vadd.f32 %v365_v44, %v268_v34  ;;  %v407_v63 = vadd.f32 %v406_v45, %v309_v35 }
 0x159   : > { %v367_v47 = vpop.f32.mrf.mxu0  ;;  %v408_v48 = vpop.f32.mrf.mxu1 }
 0x15b   : > { %v368_v52 = vpop.f32.mrf.mxu0  ;;  %v409_v53 = vpop.f32.mrf.mxu1 }
 0x15d   : > { %v461_v58 = vpop.f32.mrf.mxu0  ;;  %v502_v59 = vpop.f32.mrf.mxu1 }
 0x15e   : > { %v509_v0 = vadd.f32 %v461_v58, %v364_v54  ;;  %v511_v1 = vadd.f32 %v502_v59, %v405_v55 }
 0x15f   : > { %v463_v2 = vpop.f32.mrf.mxu0  ;;  %v504_v3 = vpop.f32.mrf.mxu1 }
 0x160   : > { %v535_v4 = vmul.f32 %v518_v56, %v509_v0  ;;  %v510_v5 = vadd.f32 %v463_v2, %v366_v62  ;;  %v512_v6 = vadd.f32 %v504_v3, %v407_v63  ;;  %v537_v10 = vmul.f32 %v526_v60, %v511_v1 }
 0x161   : > { %v465_v8 = vpop.f32.mrf.mxu0  ;;  %v506_v9 = vpop.f32.mrf.mxu1 }
 0x162   : > { %v536_v11 = vmul.f32 %v522_v61, %v510_v5  ;;  %v544_v14 = vmul.f32 %v535_v4, %v535_v4  ;;  %v538_v17 = vmul.f32 %v530_v7, %v512_v6  ;;  %v546_v18 = vmul.f32 %v537_v10, %v537_v10 }
 0x163   : > { %v466_v12 = vpop.f32.mrf.mxu0  ;;  %v507_v13 = vpop.f32.mrf.mxu1 }
 0x164   : > { %v539_v15 = vadd.f32 %v536_v11, %v535_v4  ;;  %v545_v16 = vmul.f32 %v536_v11, %v536_v11  ;;  %v547_v22 = vmul.f32 %v538_v17, %v538_v17 }
 0x166   : > { %v540_v19 = vadd.f32 %v539_v15, %v537_v10  ;;  %v548_v20 = vadd.f32 %v545_v16, %v544_v14 }
 0x168   : > { %v541_v21 = vadd.f32 %v540_v19, %v538_v17  ;;  %v549_v23 = vadd.f32 %v548_v20, %v546_v18 }
 0x16a   : > { %542 = vadd.xlane.f32.xlu0 %v541_v21  ;;  %v550_v24 = vadd.f32 %v549_v23, %v547_v22 }
 0x16c   : > { %551 = vadd.xlane.f32.xlu1 %v550_v24 }
 0x1f3   : > { %v543_v25 = vpop.xlane.xlu0 %542 }
 0x1f5   : > { %v552_v26 = vpop.xlane.xlu1 %551 }
 0x1f6   : > { %v553_v27 = vsel %vm190_vm0, %v543_v25, %v552_v26 }
 0x1f7   : > { %555 = vst.msk [vmem:[%s168_s4] sm:$0xff] %vm554_vm4, %v553_v27 }
 0x1f8 PF: > { %s13_s12 = sadd.s32 1, %s659_s12  }
 0x1f9   : > { %p10_p4 = scmp.ge.s32.totalorder %s13_s12, 4  }
 0x1fb   :  { %12 = sbr.rel (!%p10_p4) target bundleno = 1 (0x1), region = 64 }

</bundles_post_ra>
